<compile_context>
chip_gen: v6e
topology: v6e:2x2x1
jax: 0.10.0
libtpu: 0.0.40
codegen_flags: <defaults>
</compile_context>

<pallas_src>
import functools
import math

import jax
import jax.numpy as jnp
import numpy as np
from jax.experimental import pallas as pl
from jax.experimental.pallas import tpu as pltpu


def _round_up(x, m):
    return ((x + m - 1) // m) * m


# ----------------------- circuit folding (plain numpy, setup time) -----------------------

def _kron_list(mats):
    out = mats[0]
    for m in mats[1:]:
        out = np.kron(out, m)
    return out


def _embed_1q(gate, wire, n):
    mats = [np.eye(2, dtype=np.complex128) for _ in range(n)]
    mats[wire] = gate
    return _kron_list(mats)


def _cnot_full(control, target, n):
    I2 = np.eye(2, dtype=np.complex128)
    P0 = np.array([[1, 0], [0, 0]], dtype=np.complex128)
    P1 = np.array([[0, 0], [0, 1]], dtype=np.complex128)
    X = np.array([[0, 1], [1, 0]], dtype=np.complex128)
    t0 = [I2] * n
    t0[control] = P0
    t1 = [I2] * n
    t1[control] = P1
    t1[target] = X
    return _kron_list(t0) + _kron_list(t1)


def _rot(phi, theta, omega):
    # PennyLane Rot(phi, theta, omega) = RZ(omega) RY(theta) RZ(phi)
    c = np.cos(theta / 2.0)
    s = np.sin(theta / 2.0)
    return np.array(
        [[np.exp(-0.5j * (phi + omega)) * c, -np.exp(0.5j * (phi - omega)) * s],
         [np.exp(0.5j * (phi - omega)) * s, np.exp(0.5j * (phi + omega)) * c]],
        dtype=np.complex128,
    )


def strongly_entangling_unitary(angles, n_wires):
    """Full unitary of qml.StronglyEntanglingLayers(angles). angles: (L, n, 3).
    PennyLane convention: wire 0 is the most-significant bit (leftmost kron)."""
    N = 2 ** n_wires
    U = np.eye(N, dtype=np.complex128)
    L = angles.shape[0]
    for l in range(L):
        for w in range(n_wires):
            g = _rot(angles[l, w, 0], angles[l, w, 1], angles[l, w, 2])
            U = _embed_1q(g, w, n_wires) @ U
        if n_wires > 1:
            r = (l % (n_wires - 1)) + 1  # default `ranges` of StronglyEntanglingLayers
            for w in range(n_wires):
                U = _cnot_full(w, (w + r) % n_wires, n_wires) @ U
    return U


def _noise_transition_2x2(add_noise):
    """Per-wire classical transition matrix on (p0, p1); None == identity.
    add_noise=1 (PhaseShift) is a pure phase and does not change probabilities."""
    if add_noise == 2:          # AmplitudeDamping(gamma=0.1)
        g = 0.1
        return np.array([[1.0, g], [0.0, 1.0 - g]], dtype=np.float64)
    if add_noise == 3:          # DepolarizingChannel(p=0.02)
        p = 0.02
        return np.array([[1.0 - 2.0 * p / 3.0, 2.0 * p / 3.0],
                         [2.0 * p / 3.0, 1.0 - 2.0 * p / 3.0]], dtype=np.float64)
    return None                 # 0: no noise, 1: PhaseShift


def build_qdense_params(weights, shape, add_noise=0):
    """Fold the circuit (and noise) into dense, lane-aligned matrices at setup time."""
    if isinstance(shape, int):
        shape = (shape, shape)
    width, height = shape
    pixels = width * height
    wires = math.ceil(math.log2(pixels))
    N = 2 ** wires

    angles = np.tanh(np.asarray(weights, dtype=np.float64))
    U = strongly_entangling_unitary(angles, wires)           # (N, N) complex128

    K2 = _noise_transition_2x2(add_noise)
    has_noise = K2 is not None
    M = None
    if has_noise:
        M = K2
        for _ in range(wires - 1):
            M = np.kron(M, K2)                               # (N, N) stochastic

    has_pad = N > pixels
    pad_norm2 = float(N - pixels) * 0.01                     # ||0.1 * padding||^2

    # Lane-aligned layout: amplitude columns, output columns and (when padding is
    # needed anyway) the K dim are multiples of 128 so the re|im split, the MXU N
    # dim and the output stores are 128-lane dense (unmasked vst).
    n_amp = N if has_noise else pixels                       # amplitude cols we need
    A = _round_up(n_amp, 128)                                # padded amplitude cols
    out_cols = _round_up(pixels, 128)                        # padded output cols

    need_x_pad = (pixels % 128 != 0)
    fold_pad = has_pad and need_x_pad                        # fold 0.1-padding into uct
    K_in = _round_up(pixels + (1 if fold_pad else 0), 128) if need_x_pad else pixels

    # No-noise path: fold the final `* pixels` scale into the amplitudes (sqrt),
    # so the kernel epilogue is a single 1/norm2 multiply on both paths.
    amp_scale = 1.0 if has_noise else math.sqrt(float(pixels))

    UrT = U.real.T   # row j = input component j, col k = output amplitude k
    UiT = U.imag.T
    Uc = np.zeros((K_in, 2 * A), dtype=np.float64)
    Uc[:pixels, :n_amp] = UrT[:pixels, :n_amp] * amp_scale
    Uc[:pixels, A:A + n_amp] = UiT[:pixels, :n_amp] * amp_scale

    pad_row = None
    if has_pad:
        pr = np.zeros((2 * A,), dtype=np.float64)
        pr[:n_amp] = 0.1 * amp_scale * UrT[pixels:, :n_amp].sum(axis=0)
        pr[A:A + n_amp] = 0.1 * amp_scale * UiT[pixels:, :n_amp].sum(axis=0)
        if fold_pad:
            # driven by a constant 1.0 activation column at index `pixels`
            Uc[pixels, :] = pr
        else:
            pad_row = jnp.asarray(pr[None, :], dtype=jnp.float32)   # (1, 2*A)

    mt = None
    if has_noise:
        mt_np = np.zeros((A, out_cols), dtype=np.float64)
        mt_np[:N, :pixels] = M.T[:, :pixels] * pixels        # noise + scale + slice
        mt = jnp.asarray(mt_np, dtype=jnp.bfloat16)

    # epsilon keeps all-zero (degenerate) inputs finite where PyTorch would NaN;
    # the -1.0 removes the folded constant 1.0 activation column from the norm.
    norm_adj = pad_norm2 - (1.0 if fold_pad else 0.0) + 1e-30

    return dict(
        width=width, height=height, pixels=pixels, wires=wires, N=N,
        A=A, out_cols=out_cols, K_in=K_in,
        has_noise=has_noise, has_pad=has_pad, fold_pad=fold_pad,
        norm_adj=norm_adj,
        uct=jnp.asarray(Uc, dtype=jnp.bfloat16),             # (K_in, 2*A)
        pad_row=pad_row, mt=mt,
        # full-precision copies, only for the reference check in __main__
        U=U, M=M,
    )


# ----------------------------- Pallas kernel (hot path) -----------------------------

def _qdense_kernel(*refs, A, norm_adj, has_noise, has_sep_pad):
    it = iter(refs)
    x_ref = next(it)
    uct_ref = next(it)
    pad_ref = next(it) if has_sep_pad else None
    mt_ref = next(it) if has_noise else None
    o_ref = next(it)

    x = x_ref[...]                                            # (TB, K_in) bf16
    xf = x.astype(jnp.float32)
    # AmplitudeEmbedding(normalize=True): everything up to |.|^2 is linear, so the
    # normalization is deferred to one final scale.  norm_adj accounts for the
    # constant 0.1 padding features and the folded constant column.
    norm2 = jnp.sum(xf * xf, axis=-1, keepdims=True) + jnp.float32(norm_adj)

    # amp = psi @ U^T with real/imag fused into a single bf16 MXU matmul.
    r = jnp.dot(x, uct_ref[...], preferred_element_type=jnp.float32)  # (TB, 2*A) f32
    if has_sep_pad:
        r = r + pad_ref[...]                                  # 0.1-padding contribution
    re = r[:, :A]                                             # 128-lane aligned split
    im = r[:, A:]
    probs = re * re + im * im                                 # unnormalized (scaled) probs

    if has_noise:
        # classical per-wire noise channel; `* pixels` and the output slice are
        # already folded into mt at setup time.
        probs = jnp.dot(probs.astype(jnp.bfloat16), mt_ref[...],
                        preferred_element_type=jnp.float32)   # (TB, out_cols)

    inv = pl.reciprocal(norm2, approx=True)                   # EUP slot (nearly free)
    o_ref[...] = jnp.clip(probs * inv, 0.0, 1.0)


# ------------------------------------ wrapper ------------------------------------

def _vmem_cap_bytes():
    """Generation-aware scoped-VMEM cap: <= 75% of physical VMEM (v5e/v6e ~96 MiB,
    v7x ~48 MiB); conservative 48 MiB if the query is unavailable."""
    try:
        info = pltpu.get_tpu_info()
        cap = getattr(info, "vmem_capacity_bytes", None)
        if cap:
            return int(cap) * 3 // 4
    except Exception:
        pass
    return 48 << 20


def qdense_forward(x, params):
    """x: (B, 1, W, H) float (NCHW, like PyTorch). Returns (B, 1, W, H) float32."""
    width, height = params["width"], params["height"]
    pixels = params["pixels"]
    K_in, A, out_cols = params["K_in"], params["A"], params["out_cols"]
    has_noise, fold_pad = params["has_noise"], params["fold_pad"]
    has_sep_pad = params["has_pad"] and not fold_pad

    B = x.shape[0]
    # bf16 activations: native MXU dtype and half the HBM/VMEM traffic of f32.
    # In a jitted pipeline this cast fuses into the upstream producer.
    x_flat = x.reshape(B, pixels).astype(jnp.bfloat16)        # 'b 1 w h -> b (w h)'
    if K_in != pixels:
        # Lane-pad the feature dim; column `pixels` carries the folded 0.1-padding.
        xin = jnp.zeros((B, K_in), dtype=jnp.bfloat16)
        xin = xin.at[:, :pixels].set(x_flat)
        if fold_pad:
            xin = xin.at[:, pixels].set(1.0)
        x_flat = xin

    # Batch tiling: no whole-batch pad / output slice.  Small batches get one
    # exact-fit block; larger batches get >= 2 grid steps (both v7x TensorCores
    # do work) and Pallas masks the partial final block (rows are independent).
    TB_MAX = 1024
    if B <= 64:
        TB = B
    else:
        TB = min(TB_MAX, _round_up(pl.cdiv(B, 2), 8))
    grid = (pl.cdiv(B, TB),)

    consts = [params["uct"]]
    const_shapes = [(K_in, 2 * A)]
    if has_sep_pad:
        consts.append(params["pad_row"])
        const_shapes.append((1, 2 * A))
    if has_noise:
        consts.append(params["mt"])
        const_shapes.append((A, out_cols))

    const_bytes = sum(int(np.prod(c.shape)) * c.dtype.itemsize for c in consts)
    io_tile_bytes = TB * K_in * 2 + TB * out_cols * 4
    flops = 2 * B * K_in * (2 * A) + (2 * B * A * out_cols if has_noise else 0)
    bytes_accessed = int(B * K_in * 2 + const_bytes + B * out_cols * 4)

    kernel = functools.partial(
        _qdense_kernel, A=A, norm_adj=params["norm_adj"],
        has_noise=has_noise, has_sep_pad=has_sep_pad)

    def call(single_buffer_consts):
        # Constant operands (index_map == (0,0)) are kept VMEM-resident; single
        # buffering halves their footprint (matters most for big-N configs on
        # v7x's 64 MiB VMEM).
        const_kw = ({"pipeline_mode": pl.Buffered(1)} if single_buffer_consts else {})
        in_specs = [pl.BlockSpec((TB, K_in), lambda i: (i, 0))]
        for shp in const_shapes:
            in_specs.append(pl.BlockSpec(shp, lambda i: (0, 0), **const_kw))
        buf_factor = 1 if single_buffer_consts else 2
        vmem_limit = int(min(
            _vmem_cap_bytes(),
            max(int(1.5 * (buf_factor * const_bytes + 2 * io_tile_bytes)) + (16 << 20),
                32 << 20)))
        # TODO(synk): if profiling shows exposed activation/output DMA on v6e,
        # try pipeline_mode=pl.Buffered(3) on the x / output BlockSpecs.
        return pl.pallas_call(
            kernel,
            out_shape=jax.ShapeDtypeStruct((B, out_cols), jnp.float32),
            grid=grid,
            in_specs=in_specs,
            out_specs=pl.BlockSpec((TB, out_cols), lambda i: (i, 0)),
            compiler_params=pltpu.CompilerParams(
                dimension_semantics=("parallel",),
                vmem_limit_bytes=vmem_limit),
            cost_estimate=pl.CostEstimate(
                flops=int(flops), transcendentals=int(B),
                bytes_accessed=bytes_accessed),
        )(x_flat, *consts)

    try:
        out = call(True)       # single-buffered resident weights
    except Exception:
        out = call(False)      # fallback: default (double) buffering

    if out_cols != pixels:
        out = out[:, :pixels]                                 # drop lane padding
    return out.reshape(B, 1, width, height)                   # 'b (w h) -> b 1 w h'


# ---------------------------------- references ----------------------------------

def _reference_matched(x, params):
    """Pure-JAX reference with the SAME bf16 folded matrices as the kernel."""
    width, height = params["width"], params["height"]
    pixels = params["pixels"]
    K_in, A = params["K_in"], params["A"]
    has_noise, fold_pad = params["has_noise"], params["fold_pad"]
    has_sep_pad = params["has_pad"] and not fold_pad
    B = x.shape[0]

    xf = x.reshape(B, pixels).astype(jnp.bfloat16)
    if K_in != pixels:
        xin = jnp.zeros((B, K_in), dtype=jnp.bfloat16).at[:, :pixels].set(xf)
        if fold_pad:
            xin = xin.at[:, pixels].set(1.0)
        xf = xin
    x32 = xf.astype(jnp.float32)
    norm2 = jnp.sum(x32 * x32, axis=-1, keepdims=True) + jnp.float32(params["norm_adj"])
    r = jnp.dot(xf, params["uct"], preferred_element_type=jnp.float32)
    if has_sep_pad:
        r = r + params["pad_row"]
    probs = r[:, :A] ** 2 + r[:, A:] ** 2
    if has_noise:
        probs = jnp.dot(probs.astype(jnp.bfloat16), params["mt"],
                        preferred_element_type=jnp.float32)
    out = jnp.clip(probs / norm2, 0.0, 1.0)[:, :pixels]
    return out.reshape(B, 1, width, height)


def _reference_semantic(x, params):
    """Full-precision (float64) reference following the module semantics."""
    width, height = params["width"], params["height"]
    pixels, N = params["pixels"], params["N"]
    B = x.shape[0]
    xf = np.asarray(x, dtype=np.float64).reshape(B, pixels)
    if N > pixels:
        xf = np.concatenate([xf, np.full((B, N - pixels), 0.1)], axis=-1)
    psi = xf / np.linalg.norm(xf, axis=-1, keepdims=True)
    amp = psi @ params["U"].T
    probs = np.abs(amp) ** 2
    if params["M"] is not None:
        probs = probs @ params["M"].T
    out = np.clip(probs[:, :pixels] * pixels, 0.0, 1.0)
    return out.reshape(B, 1, width, height)


# ------------------------------------- demo -------------------------------------

if __name__ == "__main__":
    qdepth = 3
    key = jax.random.PRNGKey(0)
    # (shape, add_noise, batch):
    #   16x16 -> lane-aligned fast path (pixels = 256 = 2**8, no embedding pad)
    #   8x8   -> lane-padding path (pixels = 64 -> 128)
    #   5x5   -> embedding padding folded into the weights + depolarizing channel
    configs = [((16, 16), 0, 2), ((16, 16), 2, 2), ((8, 8), 0, 3), ((5, 5), 3, 2)]

    for shape, add_noise, batch in configs:
        width, height = shape
        pixels = width * height
        wires = math.ceil(math.log2(pixels))

        key, kw, kx = jax.random.split(key, 3)
        # Deterministic "randn * 0.4" weights; circuit uses tanh(weights).
        weights = jax.random.normal(kw, (qdepth, wires, 3), dtype=jnp.float32) * 0.4
        x = jax.random.normal(kx, (batch, 1, width, height), dtype=jnp.float32)

        params = build_qdense_params(np.asarray(weights), shape, add_noise)
        out = jax.block_until_ready(qdense_forward(x, params))
        assert out.shape == (batch, 1, width, height)

        # Tight check against the same bf16 folded-matrix math in plain JAX
        # (residual dominated by the approx EUP reciprocal + MXU accumulation order).
        ref_tight = np.asarray(_reference_matched(x, params))
        err_tight = float(np.max(np.abs(np.asarray(out) - ref_tight)))
        assert err_tight < 1e-2, ("matched-ref mismatch", shape, add_noise, err_tight)

        # Semantic check against float64 module math; bf16 quantization of the
        # weights/activations dominates the residual error here.
        ref_full = _reference_semantic(x, params)
        err_full = float(np.max(np.abs(np.asarray(out, dtype=np.float64) - ref_full)))
        assert err_full < 5e-2, ("semantic-ref mismatch", shape, add_noise, err_full)

    print("KERNEL_OK")
</pallas_src>

<mosaic_0001>
module attributes {stable_mosaic.version = 11 : i64} {
  func.func @_qdense_kernel(%arg0: i32, %arg1: memref<2x256xbf16, #tpu.memory_space<vmem>>, %arg2: memref<256x512xbf16, #tpu.memory_space<vmem>>, %arg3: memref<2x256xf32, #tpu.memory_space<vmem>>) attributes {dimension_semantics = [#tpu.dimension_semantics<parallel>], iteration_bounds = array<i64: 1>, scalar_prefetch = 0 : i64, scratch_operands = 0 : i64, tpu.core_type = #tpu.core_type<tc>, window_params = [{transform_indices = @transform_0, window_bounds = array<i64: 2, 256>}, {pipeline_mode = #tpu.pipeline_mode<synchronous>, transform_indices = @transform_1, window_bounds = array<i64: 256, 512>}, {transform_indices = @transform_2, window_bounds = array<i64: 2, 256>}]} {
    %c0 = arith.constant 0 : index
    %c0_0 = arith.constant 0 : index
    %0 = vector.load %arg1[%c0, %c0_0] : memref<2x256xbf16, #tpu.memory_space<vmem>>, vector<2x256xbf16>
    %1 = arith.extf %0 : vector<2x256xbf16> to vector<2x256xf32>
    %2 = arith.mulf %1, %1 : vector<2x256xf32>
    %cst = arith.constant dense<0.000000e+00> : vector<2xf32>
    %3 = vector.multi_reduction <add>, %2, %cst [1] : vector<2x256xf32> to vector<2xf32>
    %4 = vector.shape_cast %3 : vector<2xf32> to vector<2x1xf32>
    %cst_1 = arith.constant 1.000000e-30 : f32
    %5 = vector.broadcast %cst_1 : f32 to vector<2x1xf32>
    %6 = arith.addf %4, %5 : vector<2x1xf32>
    %c0_2 = arith.constant 0 : index
    %c0_3 = arith.constant 0 : index
    %7 = vector.load %arg2[%c0_2, %c0_3] : memref<256x512xbf16, #tpu.memory_space<vmem>>, vector<256x512xbf16>
    %cst_4 = arith.constant dense<0.000000e+00> : vector<2x512xf32>
    %8 = tpu.matmul %0, %7, %cst_4 {dimension_numbers = #tpu.dot_dimension_numbers<[1], [0], [0], [1], [0, 0, 1, 1], [], []>} : vector<2x256xbf16>, vector<256x512xbf16>, vector<2x512xf32> -> vector<2x512xf32>
    %9 = vector.extract_strided_slice %8 {offsets = [0, 0], sizes = [2, 256], strides = [1, 1]} : vector<2x512xf32> to vector<2x256xf32>
    %10 = vector.extract_strided_slice %8 {offsets = [0, 256], sizes = [2, 256], strides = [1, 1]} : vector<2x512xf32> to vector<2x256xf32>
    %11 = arith.mulf %9, %9 : vector<2x256xf32>
    %12 = arith.mulf %10, %10 : vector<2x256xf32>
    %13 = arith.addf %11, %12 : vector<2x256xf32>
    %14 = tpu.reciprocal %6 {approx = true} : vector<2x1xf32> -> vector<2x1xf32>
    %15 = vector.broadcast %14 : vector<2x1xf32> to vector<2x256xf32>
    %16 = arith.mulf %13, %15 : vector<2x256xf32>
    %cst_5 = arith.constant 0.000000e+00 : f32
    %cst_6 = arith.constant 1.000000e+00 : f32
    %17 = vector.broadcast %cst_5 : f32 to vector<2x256xf32>
    %18 = arith.maximumf %17, %16 : vector<2x256xf32>
    %19 = vector.broadcast %cst_6 : f32 to vector<2x256xf32>
    %20 = arith.minimumf %19, %18 : vector<2x256xf32>
    %c0_7 = arith.constant 0 : index
    %c0_8 = arith.constant 0 : index
    %21 = vector.load %arg3[%c0_7, %c0_8] : memref<2x256xf32, #tpu.memory_space<vmem>>, vector<2x256xf32>
    tpu.vector_store %arg3[%c0_7, %c0_8], %20 {strides = array<i32>} : memref<2x256xf32, #tpu.memory_space<vmem>>, vector<2x256xf32>,
    return
  }
  func.func @transform_0(%arg0: i32) -> (i32, i32) {
    %c0_i32 = arith.constant 0 : i32
    %c0_i32_0 = arith.constant 0 : i32
    return %arg0, %c0_i32 : i32, i32
  }
  func.func @transform_1(%arg0: i32) -> (i32, i32) {
    %c0_i32 = arith.constant 0 : i32
    %c0_i32_0 = arith.constant 0 : i32
    %c0_i32_1 = arith.constant 0 : i32
    return %c0_i32, %c0_i32_0 : i32, i32
  }
  func.func @transform_2(%arg0: i32) -> (i32, i32) {
    %c0_i32 = arith.constant 0 : i32
    %c0_i32_0 = arith.constant 0 : i32
    return %arg0, %c0_i32 : i32, i32
  }
}

module attributes {stable_mosaic.version = 11 : i64} {
  func.func @_qdense_kernel(%arg0: i32, %arg1: memref<2x256xbf16, #tpu.memory_space<vmem>>, %arg2: memref<256x512xbf16, #tpu.memory_space<vmem>>, %arg3: memref<2x256xf32, #tpu.memory_space<vmem>>) attributes {dimension_semantics = [#tpu.dimension_semantics<parallel>], iteration_bounds = array<i64: 1>, scalar_prefetch = 0 : i64, scratch_operands = 0 : i64, tpu.core_type = #tpu.core_type<tc>, window_params = [{transform_indices = @transform_0, window_bounds = array<i64: 2, 256>}, {pipeline_mode = #tpu.pipeline_mode<synchronous>, transform_indices = @transform_1, window_bounds = array<i64: 256, 512>}, {transform_indices = @transform_2, window_bounds = array<i64: 2, 256>}]} {
    %c0 = arith.constant 0 : index
    %c0_0 = arith.constant 0 : index
    %0 = vector.load %arg1[%c0, %c0_0] : memref<2x256xbf16, #tpu.memory_space<vmem>>, vector<2x256xbf16>
    %1 = arith.extf %0 : vector<2x256xbf16> to vector<2x256xf32>
    %2 = arith.mulf %1, %1 : vector<2x256xf32>
    %cst = arith.constant dense<0.000000e+00> : vector<2xf32>
    %3 = vector.multi_reduction <add>, %2, %cst [1] : vector<2x256xf32> to vector<2xf32>
    %4 = vector.shape_cast %3 : vector<2xf32> to vector<2x1xf32>
    %cst_1 = arith.constant 1.000000e-30 : f32
    %5 = vector.broadcast %cst_1 : f32 to vector<2x1xf32>
    %6 = arith.addf %4, %5 : vector<2x1xf32>
    %c0_2 = arith.constant 0 : index
    %c0_3 = arith.constant 0 : index
    %7 = vector.load %arg2[%c0_2, %c0_3] : memref<256x512xbf16, #tpu.memory_space<vmem>>, vector<256x512xbf16>
    %cst_4 = arith.constant dense<0.000000e+00> : vector<2x512xf32>
    %8 = tpu.matmul %0, %7, %cst_4 {dimension_numbers = #tpu.dot_dimension_numbers<[1], [0], [0], [1], [0, 0, 1, 1], [], []>} : vector<2x256xbf16>, vector<256x512xbf16>, vector<2x512xf32> -> vector<2x512xf32>
    %9 = vector.extract_strided_slice %8 {offsets = [0, 0], sizes = [2, 256], strides = [1, 1]} : vector<2x512xf32> to vector<2x256xf32>
    %10 = vector.extract_strided_slice %8 {offsets = [0, 256], sizes = [2, 256], strides = [1, 1]} : vector<2x512xf32> to vector<2x256xf32>
    %11 = arith.mulf %9, %9 : vector<2x256xf32>
    %12 = arith.mulf %10, %10 : vector<2x256xf32>
    %13 = arith.addf %11, %12 : vector<2x256xf32>
    %14 = tpu.reciprocal %6 {approx = true} : vector<2x1xf32> -> vector<2x1xf32>
    %15 = vector.broadcast %14 : vector<2x1xf32> to vector<2x256xf32>
    %16 = arith.mulf %13, %15 : vector<2x256xf32>
    %cst_5 = arith.constant 0.000000e+00 : f32
    %cst_6 = arith.constant 1.000000e+00 : f32
    %17 = vector.broadcast %cst_5 : f32 to vector<2x256xf32>
    %18 = arith.maximumf %17, %16 : vector<2x256xf32>
    %19 = vector.broadcast %cst_6 : f32 to vector<2x256xf32>
    %20 = arith.minimumf %19, %18 : vector<2x256xf32>
    %c0_7 = arith.constant 0 : index
    %c0_8 = arith.constant 0 : index
    %21 = vector.load %arg3[%c0_7, %c0_8] : memref<2x256xf32, #tpu.memory_space<vmem>>, vector<2x256xf32>
    tpu.vector_store %arg3[%c0_7, %c0_8], %20 {strides = array<i32>} : memref<2x256xf32, #tpu.memory_space<vmem>>, vector<2x256xf32>,
    return
  }
  func.func @transform_0(%arg0: i32) -> (i32, i32) {
    %c0_i32 = arith.constant 0 : i32
    %c0_i32_0 = arith.constant 0 : i32
    return %arg0, %c0_i32 : i32, i32
  }
  func.func @transform_1(%arg0: i32) -> (i32, i32) {
    %c0_i32 = arith.constant 0 : i32
    %c0_i32_0 = arith.constant 0 : i32
    %c0_i32_1 = arith.constant 0 : i32
    return %c0_i32, %c0_i32_0 : i32, i32
  }
  func.func @transform_2(%arg0: i32) -> (i32, i32) {
    %c0_i32 = arith.constant 0 : i32
    %c0_i32_0 = arith.constant 0 : i32
    return %arg0, %c0_i32 : i32, i32
  }
}

</mosaic_0001>

<bundles_post_ra>
// kernel: tpu_custom_call.1
= control target key start
LH: loop header
LB: loop body
LE: loop exit
PB: predicated region body
PF: predicated region fallthrough
CT: control target
= control target key end

     0   :  { %7 = vsyncpa [#allocation3], 0  ;;  %s858_s0 = inlined_call_operand.hbm [shape: bf16[2,256], index: 0, kind: input, shape index: {}]   ;;  %s859_s1 = inlined_call_operand.hbm [shape: bf16[256,512], index: 1, kind: input, shape index: {}]   ;;  %s860_s2 = inlined_call_operand.hbm [shape: f32[2,256], index: 2, kind: output, shape index: {}]  }
   0x1   :  { %8 = vsyncpa [#allocation6], 0 }
   0x2   :  { %9 = vsyncpa [#allocation4], 0  ;;  %s827_s9 = smov [#allocation2]   ;;  %s828_s11 = smov [#allocation5]  }
   0x3   :  { %s16_s10 = sshll.u32 %s827_s9, 4  ;;  %s25_s12 = sshll.u32 %s828_s11, 4  ;;  %s17_s10 = int_to_ptr.vmem [resolvable:$true] %s16_s10  ;;  %s26_s12 = int_to_ptr.vmem [resolvable:$true] %s25_s12 }
   0x4   :  { %s769_s13 = scalar_lea.vmem %s17_s10, 32  ;;  %p774_p1 = scmp.lt.s32.totalorder %s17_s10, %s17_s10 }
   0x5   :  { %p770_p0 = scmp.ne.s32.totalorder %s17_s10, %s769_s13  ;;  %p775_p2 = scmp.lt.s32.totalorder %s769_s13, %s769_s13 }
   0x7   :  { %p776_p3 = por %p775_p2, %p774_p1 }
   0x9   :  { %p777_p4 = pnand %p776_p3, %p770_p0 }
   0xb   :  { %780 = shalt.err (!%p777_p4)
}
   0xc   :  { %19 = dma.hbm_to_vmem [thread:$0]  %s858_s0, 32, %s17_s10, [#allocation3]  }
   0xd   :  { %s789_s16 = scalar_lea.vmem %s26_s12, 8192  ;;  %p794_p6 = scmp.lt.s32.totalorder %s26_s12, %s26_s12 }
   0xe   :  { %p790_p5 = scmp.ne.s32.totalorder %s26_s12, %s789_s16  ;;  %p795_p7 = scmp.lt.s32.totalorder %s789_s16, %s789_s16 }
  0x10   :  { %p796_p8 = por %p795_p7, %p794_p6 }
  0x12   :  { %p797_p9 = pnand %p796_p8, %p790_p5 }
  0x14   :  { %800 = shalt.err (!%p797_p9)
}
  0x15   :  { %s829_s17 = smov 256   ;;  %s830_s18 = smov 16  }
  0x16   :  { %31 = dma.hbm_to_vmem [thread:$0]  %s859_s1, 8192, %s26_s12, [#allocation6], %s829_s17, %s829_s17, %s830_s18  }
  0x17   :  { %821 = dma.done.wait [#allocation3], 32  }
  0x18   :  { %822 = vsyncadd [#allocation3], 4294967264 }
  0x19   :  { %823 = dma.done.wait [#allocation6], 8192  }
  0x1a   :  { %824 = vsyncadd [#allocation6], 4294959104  ;;  %v663_v0 = vld [vmem:[#allocation5 + $0xe4] ss:$16 sps:$4 sm:$0xff]   ;;  %v665_v1 = vld [vmem:[#allocation5 + $0xec] ss:$16 sps:$4 sm:$0xff]   ;;  %v45_v36 = vlaneseq }
  0x1b   :  { %468 = vmatprep.subr.bf16.mxu0 %v663_v0  ;;  %v667_v2 = vld [vmem:[#allocation5 + $0xe0] ss:$16 sps:$4 sm:$0xff]   ;;  %v668_v3 = vld [vmem:[#allocation5 + $0xe8] ss:$16 sps:$4 sm:$0xff]   ;;  %509 = vmatprep.subr.bf16.mxu1 %v665_v1  ;;  %v669_v4 = vld [vmem:[#allocation5 + $0xc4] ss:$16 sps:$4 sm:$0xff]  }
  0x1c   :  { %469 = vmatpush1.bf16.msra.mxu0 %v667_v2  ;;  %510 = vmatpush1.bf16.msra.mxu1 %v668_v3  ;;  %v671_v5 = vld [vmem:[#allocation5 + $0xcc] ss:$16 sps:$4 sm:$0xff]   ;;  %v673_v6 = vld [vmem:[#allocation5 + $0xc0] ss:$16 sps:$4 sm:$0xff]   ;;  %v674_v7 = vld [vmem:[#allocation5 + $0xc8] ss:$16 sps:$4 sm:$0xff]  }
  0x1d   :  { %470 = vmatprep.subr.bf16.mxu0 %v669_v4  ;;  %511 = vmatprep.subr.bf16.mxu1 %v671_v5  ;;  %v675_v8 = vld [vmem:[#allocation5 + $0xa4] ss:$16 sps:$4 sm:$0xff]   ;;  %v677_v9 = vld [vmem:[#allocation5 + $0xac] ss:$16 sps:$4 sm:$0xff]   ;;  %v679_v10 = vld [vmem:[#allocation5 + $0xa0] ss:$16 sps:$4 sm:$0xff]  }
  0x1e   :  { %v680_v11 = vld [vmem:[#allocation5 + $0xa8] ss:$16 sps:$4 sm:$0xff]   ;;  %v681_v12 = vld [vmem:[#allocation5 + $0x84] ss:$16 sps:$4 sm:$0xff]   ;;  %v683_v13 = vld [vmem:[#allocation5 + $0x8c] ss:$16 sps:$4 sm:$0xff]  }
  0x1f   :  { %v685_v14 = vld [vmem:[#allocation5 + $0x80] ss:$16 sps:$4 sm:$0xff]   ;;  %v686_v15 = vld [vmem:[#allocation5 + $0x88] ss:$16 sps:$4 sm:$0xff]   ;;  %v687_v16 = vld [vmem:[#allocation5 + $0x64] ss:$16 sps:$4 sm:$0xff]  }
  0x20   :  { %471 = vmatpush1.bf16.msra.mxu0 %v673_v6  ;;  %512 = vmatpush1.bf16.msra.mxu1 %v674_v7  ;;  %v689_v17 = vld [vmem:[#allocation5 + $0x6c] ss:$16 sps:$4 sm:$0xff]   ;;  %v691_v18 = vld [vmem:[#allocation5 + $0x60] ss:$16 sps:$4 sm:$0xff]   ;;  %v692_v19 = vld [vmem:[#allocation5 + $0x68] ss:$16 sps:$4 sm:$0xff]  }
  0x21   :  { %472 = vmatprep.subr.bf16.mxu0 %v675_v8  ;;  %513 = vmatprep.subr.bf16.mxu1 %v677_v9  ;;  %v693_v20 = vld [vmem:[#allocation5 + $0x44] ss:$16 sps:$4 sm:$0xff]   ;;  %v695_v21 = vld [vmem:[#allocation5 + $0x4c] ss:$16 sps:$4 sm:$0xff]   ;;  %v697_v22 = vld [vmem:[#allocation5 + $0x40] ss:$16 sps:$4 sm:$0xff]  }
  0x22   :  { %v698_v23 = vld [vmem:[#allocation5 + $0x48] ss:$16 sps:$4 sm:$0xff]   ;;  %v699_v24 = vld [vmem:[#allocation5 + $0x24] ss:$16 sps:$4 sm:$0xff]   ;;  %v701_v25 = vld [vmem:[#allocation5 + $0x2c] ss:$16 sps:$4 sm:$0xff]  }
  0x23   :  { %v703_v26 = vld [vmem:[#allocation5 + $0x20] ss:$16 sps:$4 sm:$0xff]   ;;  %v704_v27 = vld [vmem:[#allocation5 + $0x28] ss:$16 sps:$4 sm:$0xff]   ;;  %v705_v28 = vld [vmem:[#allocation5 + $0x4] ss:$16 sps:$4 sm:$0xff]  }
  0x24   :  { %473 = vmatpush1.bf16.msra.mxu0 %v679_v10  ;;  %514 = vmatpush1.bf16.msra.mxu1 %v680_v11  ;;  %v707_v29 = vld [vmem:[#allocation5 + $0xc] ss:$16 sps:$4 sm:$0xff]   ;;  %v709_v30 = vld [vmem:[#allocation5] ss:$16 sps:$4 sm:$0xff]   ;;  %v710_v31 = vld [vmem:[#allocation5 + $0x8] ss:$16 sps:$4 sm:$0xff]  }
  0x25   :  { %474 = vmatprep.subr.bf16.mxu0 %v681_v12  ;;  %515 = vmatprep.subr.bf16.mxu1 %v683_v13  ;;  %v711_v32 = vld [vmem:[#allocation5 + $0x1e4] ss:$16 sps:$4 sm:$0xff]   ;;  %v713_v33 = vld [vmem:[#allocation5 + $0x1ec] ss:$16 sps:$4 sm:$0xff]   ;;  %v715_v34 = vld [vmem:[#allocation5 + $0x1e0] ss:$16 sps:$4 sm:$0xff]  }
  0x26   :  { %v716_v35 = vld [vmem:[#allocation5 + $0x1e8] ss:$16 sps:$4 sm:$0xff]   ;;  %v831_v37 = vmov 1966171168   ;;  %v717_v39 = vld [vmem:[#allocation5 + $0x1c4] ss:$16 sps:$4 sm:$0xff]  }
  0x27   :  { %v125_v38 = vunpack.c.l.s4 %v831_v37  ;;  %v719_v40 = vld [vmem:[#allocation5 + $0x1cc] ss:$16 sps:$4 sm:$0xff]   ;;  %v721_v41 = vld [vmem:[#allocation5 + $0x1c0] ss:$16 sps:$4 sm:$0xff]   ;;  %v46_v42 = vshrl.u32 %v45_v36, 7  ;;  %vm52_vm0 = vcmask 1041408  }
  0x28   :  { %475 = vmatpush1.bf16.msra.mxu0 %v685_v14  ;;  %516 = vmatpush1.bf16.msra.mxu1 %v686_v15  ;;  %v832_v44 = vmov 1983009808   ;;  %v722_v46 = vld [vmem:[#allocation5 + $0x1c8] ss:$16 sps:$4 sm:$0xff]   ;;  %v723_v47 = vld [vmem:[#allocation5 + $0x1a4] ss:$16 sps:$4 sm:$0xff]  }
  0x29   :  { %476 = vmatprep.subr.bf16.mxu0 %v687_v16  ;;  %517 = vmatprep.subr.bf16.mxu1 %v689_v17  ;;  %v126_v43 = vunpack.c.0.s8 %v125_v38  ;;  %v43_v45 = vunpack.c.l.s4 %v832_v44  ;;  %v725_v48 = vld [vmem:[#allocation5 + $0x1ac] ss:$16 sps:$4 sm:$0xff]   ;;  %v727_v49 = vld [vmem:[#allocation5 + $0x1a0] ss:$16 sps:$4 sm:$0xff]   ;;  %v728_v50 = vld [vmem:[#allocation5 + $0x1a8] ss:$16 sps:$4 sm:$0xff]  }
  0x2a   :  { %v729_v53 = vld [vmem:[#allocation5 + $0x184] ss:$16 sps:$4 sm:$0xff]   ;;  %v731_v54 = vld [vmem:[#allocation5 + $0x18c] ss:$16 sps:$4 sm:$0xff]   ;;  %v733_v59 = vld [vmem:[#allocation5 + $0x180] ss:$16 sps:$4 sm:$0xff]  }
  0x2b   :  { %v129_v51 = vsub.s32 %v126_v43, %v46_v42  ;;  %v44_v52 = vunpack.c.0.s8 %v43_v45  ;;  %v38_v55 = vld [vmem:[#allocation2] sm:$0x3]  ;;  %v734_v60 = vld [vmem:[#allocation5 + $0x188] ss:$16 sps:$4 sm:$0xff]   ;;  %v735_v61 = vld [vmem:[#allocation5 + $0x164] ss:$16 sps:$4 sm:$0xff]  }
  0x2c   :  { %477 = vmatpush1.bf16.msra.mxu0 %v691_v18  ;;  %518 = vmatpush1.bf16.msra.mxu1 %v692_v19  ;;  %v39_v57 = vunpack.c.l.bf16 %v38_v55  ;;  %v737_v62 = vld [vmem:[#allocation5 + $0x16c] ss:$16 sps:$4 sm:$0xff]   ;;  %v739_v3 = vld [vmem:[#allocation5 + $0x160] ss:$16 sps:$4 sm:$0xff]   ;;  %v740_v4 = vld [vmem:[#allocation5 + $0x168] ss:$16 sps:$4 sm:$0xff]  }
  0x2d   :  { %478 = vmatprep.subr.bf16.mxu0 %v693_v20  ;;  %519 = vmatprep.subr.bf16.mxu1 %v695_v21  ;;  %v130_v56 = vrot.slane %v38_v55, %v129_v51  ;;  %v47_v58 = vsub.s32 %v44_v52, %v46_v42  ;;  %v741_v5 = vld [vmem:[#allocation5 + $0x144] ss:$16 sps:$4 sm:$0xff]   ;;  %v743_v6 = vld [vmem:[#allocation5 + $0x14c] ss:$16 sps:$4 sm:$0xff]   ;;  %v745_v10 = vld [vmem:[#allocation5 + $0x140] ss:$16 sps:$4 sm:$0xff]  }
  0x2e   :  { %v40_v0 = vmul.f32 %v39_v57, %v39_v57  ;;  %v746_v11 = vld [vmem:[#allocation5 + $0x148] ss:$16 sps:$4 sm:$0xff]   ;;  %v747_v13 = vld [vmem:[#allocation5 + $0x124] ss:$16 sps:$4 sm:$0xff]   ;;  %v749_v14 = vld [vmem:[#allocation5 + $0x12c] ss:$16 sps:$4 sm:$0xff]  }
  0x2f   :  { %v131_v63 = vcombine.high %v130_v56, %v130_v56  ;;  %v751_v15 = vld [vmem:[#allocation5 + $0x120] ss:$16 sps:$4 sm:$0xff]   ;;  %v752_v16 = vld [vmem:[#allocation5 + $0x128] ss:$16 sps:$4 sm:$0xff]   ;;  %v753_v17 = vld [vmem:[#allocation5 + $0x104] ss:$16 sps:$4 sm:$0xff]   ;;  %v138_v21 = vrot.slane %v130_v56, %v129_v51 }
  0x30   :  { %479 = vmatpush1.bf16.msra.mxu0 %v697_v22  ;;  %520 = vmatpush1.bf16.msra.mxu1 %v698_v23  ;;  %v48_v2 = vrot.slane %v40_v0, %v47_v58  ;;  %v755_v18 = vld [vmem:[#allocation5 + $0x10c] ss:$16 sps:$4 sm:$0xff]   ;;  %v757_v19 = vld [vmem:[#allocation5 + $0x100] ss:$16 sps:$4 sm:$0xff]   ;;  %v758_v20 = vld [vmem:[#allocation5 + $0x108] ss:$16 sps:$4 sm:$0xff]  }
  0x31   :  { %480 = vmatprep.subr.bf16.mxu0 %v699_v24  ;;  %521 = vmatprep.subr.bf16.mxu1 %v701_v25  ;;  %v145_v1 = vrot.slane %v131_v63, %v129_v51  ;;  %s833_s0 = smov [#allocation7]  }
  0x32   :  { %v49_v7 = vcombine.high %v48_v2, %v48_v2  ;;  %v53_v8 = vsel %vm52_vm0, %v48_v2, 0.0  ;;  %s581_s1 = sshll.u32 %s833_s0, 4  ;;  %s582_s1 = int_to_ptr.vmem [resolvable:$true] %s581_s1 }
  0x33   :  { %500 = vmatprep.mubr.bf16.mxu0 %v145_v1  ;;  %541 = vmatprep.mubr.bf16.mxu1 %v145_v1  ;;  %s801_s21 = scalar_lea.vmem %s582_s1, 64  ;;  %p806_p11 = scmp.lt.s32.totalorder %s582_s1, %s582_s1 }
  0x34   :  { %481 = vmatpush1.bf16.msra.mxu0 %v703_v26  ;;  %522 = vmatpush1.bf16.msra.mxu1 %v704_v27  ;;  %v54_v9 = vsel %vm52_vm0, %v49_v7, 0.0  ;;  %p802_p10 = scmp.ne.s32.totalorder %s582_s1, %s801_s21  ;;  %p807_p12 = scmp.lt.s32.totalorder %s801_s21, %s801_s21 }
  0x35   :  { %482 = vmatprep.subr.bf16.mxu0 %v705_v28  ;;  %523 = vmatprep.subr.bf16.mxu1 %v707_v29  ;;  %v55_v12 = vadd.f32 %v54_v9, %v53_v8 }
  0x36   :  { %p808_p13 = por %p807_p12, %p806_p11 }
  0x37   :  { %56 = vadd.xlane.f32.xlu0 %v55_v12 }
  0x38   :  { %483 = vmatpush1.bf16.msra.mxu0 %v709_v30  ;;  %524 = vmatpush1.bf16.msra.mxu1 %v710_v31  ;;  %p809_p0 = pnand %p808_p13, %p802_p10 }
  0x39   :  { %484 = vmatprep.subr.bf16.mxu0 %v711_v32  ;;  %525 = vmatprep.subr.bf16.mxu1 %v713_v33 }
  0x3c   :  { %485 = vmatpush2.bf16.msra.mxu0 %v715_v34  ;;  %526 = vmatpush2.bf16.msra.mxu1 %v716_v35 }
  0x3d   :  { %486 = vmatprep.subr.bf16.mxu0 %v717_v39  ;;  %527 = vmatprep.subr.bf16.mxu1 %v719_v40 }
  0x40   :  { %487 = vmatpush2.bf16.msra.mxu0 %v721_v41  ;;  %528 = vmatpush2.bf16.msra.mxu1 %v722_v46 }
  0x41   :  { %488 = vmatprep.subr.bf16.mxu0 %v723_v47  ;;  %529 = vmatprep.subr.bf16.mxu1 %v725_v48 }
  0x44   :  { %489 = vmatpush2.bf16.msra.mxu0 %v727_v49  ;;  %530 = vmatpush2.bf16.msra.mxu1 %v728_v50 }
  0x45   :  { %490 = vmatprep.subr.bf16.mxu0 %v729_v53  ;;  %531 = vmatprep.subr.bf16.mxu1 %v731_v54 }
  0x48   :  { %491 = vmatpush2.bf16.msra.mxu0 %v733_v59  ;;  %532 = vmatpush2.bf16.msra.mxu1 %v734_v60 }
  0x49   :  { %492 = vmatprep.subr.bf16.mxu0 %v735_v61  ;;  %533 = vmatprep.subr.bf16.mxu1 %v737_v62 }
  0x4c   :  { %493 = vmatpush2.bf16.msra.mxu0 %v739_v3  ;;  %534 = vmatpush2.bf16.msra.mxu1 %v740_v4 }
  0x4d   :  { %494 = vmatprep.subr.bf16.mxu0 %v741_v5  ;;  %535 = vmatprep.subr.bf16.mxu1 %v743_v6 }
  0x50   :  { %495 = vmatpush2.bf16.msra.mxu0 %v745_v10  ;;  %536 = vmatpush2.bf16.msra.mxu1 %v746_v11 }
  0x51   :  { %496 = vmatprep.subr.bf16.mxu0 %v747_v13  ;;  %537 = vmatprep.subr.bf16.mxu1 %v749_v14 }
  0x54   :  { %497 = vmatpush2.bf16.msra.mxu0 %v751_v15  ;;  %538 = vmatpush2.bf16.msra.mxu1 %v752_v16 }
  0x55   :  { %498 = vmatprep.subr.bf16.mxu0 %v753_v17  ;;  %539 = vmatprep.subr.bf16.mxu1 %v755_v18 }
  0x58   :  { %499 = vmatpush2.bf16.msra.mxu0 %v757_v19  ;;  %540 = vmatpush2.bf16.msra.mxu1 %v758_v20 }
  0x5b   :  { %501 = vmatmul.mubr.bf16.vlgmr.msra.gmra.mxu0 %v138_v21  ;;  %542 = vmatmul.mubr.bf16.vlgmr.msra.gmra.mxu1 %v138_v21 }
  0xc0   :  { %v57_v22 = vpop.xlane.xlu0 %56 }
  0xc1   :  { %v58_v23 = vadd.f32 1e-30, %v57_v22 }
  0xc3   :  { %759 = vrcp.f32 %v58_v23 }
  0xd0   :  { %v760_v28 = vpop.eup %759 }
 0x11b   :  { %v502_v24 = vpop.f32.mrf.mxu0  ;;  %v543_v25 = vpop.f32.mrf.mxu1 }
 0x11c   :  { %v550_v26 = vmul.f32 %v502_v24, %v502_v24  ;;  %v552_v27 = vmul.f32 %v543_v25, %v543_v25 }
 0x11d   :  { %v504_v29 = vpop.f32.mrf.mxu0  ;;  %v545_v30 = vpop.f32.mrf.mxu1 }
 0x11e   :  { %v554_v31 = vadd.f32 %v552_v27, %v550_v26  ;;  %v551_v32 = vmul.f32 %v504_v29, %v504_v29  ;;  %v553_v33 = vmul.f32 %v545_v30, %v545_v30 }
 0x11f   :  { %v506_v34 = vpop.f32.mrf.mxu0  ;;  %v547_v35 = vpop.f32.mrf.mxu1 }
 0x120   :  { %v557_v36 = vmul.f32 %v760_v28, %v554_v31  ;;  %v555_v37 = vadd.f32 %v553_v33, %v551_v32 }
 0x121   :  { %v507_v38 = vpop.f32.mrf.mxu0  ;;  %v548_v39 = vpop.f32.mrf.mxu1 }
 0x122   :  { %v559_v40 = vmax.f32 %v557_v36, 0.0  ;;  %v558_v41 = vmul.f32 %v760_v28, %v555_v37 }
 0x124   :  { %v560_v42 = vmax.f32 %v558_v41, 0.0  ;;  %v561_v43 = vmin.f32 %v559_v40, 1.0 }
 0x126   :  { %v562_v44 = vmin.f32 %v560_v42, 1.0 }
 0x128   :  { %v565_v45 = vcombine.low %v561_v43, %v562_v44 }
 0x12a   :  { %655 = vst.sshfl [vmem:[#allocation7] sm:$0x33 pattern:$0x76325410] %v565_v45 }
 0x12b   :  { %812 = shalt.err (!%p809_p0)
}
 0x12c   :  { %584 = dma.vmem_to_hbm [thread:$0]  %s582_s1, 64, %s860_s2, [#allocation4]  }
 0x12d   :  { %825 = dma.done.wait [#allocation4], 64  }
 0x12e   :  { %826 = vsyncadd [#allocation4], 4294967232 }
 0x12f   :  { %588 = vsyncpa [#allocation3], 1 }
 0x130   :  { %589 = vsyncpa [#allocation6], 1 }
 0x131   :  { %590 = vsyncpa [#allocation4], 1 }

// kernel: tpu_custom_call.1
= control target key start
LH: loop header
LB: loop body
LE: loop exit
PB: predicated region body
PF: predicated region fallthrough
CT: control target
= control target key end

     0   :  { %7 = vsyncpa [#allocation3], 0  ;;  %s858_s0 = inlined_call_operand.hbm [shape: bf16[2,256], index: 0, kind: input, shape index: {}]   ;;  %s859_s1 = inlined_call_operand.hbm [shape: bf16[256,512], index: 1, kind: input, shape index: {}]   ;;  %s860_s2 = inlined_call_operand.hbm [shape: f32[2,256], index: 2, kind: output, shape index: {}]  }
   0x1   :  { %8 = vsyncpa [#allocation6], 0 }
   0x2   :  { %9 = vsyncpa [#allocation4], 0  ;;  %s827_s9 = smov [#allocation2]   ;;  %s828_s11 = smov [#allocation5]  }
   0x3   :  { %s16_s10 = sshll.u32 %s827_s9, 4  ;;  %s25_s12 = sshll.u32 %s828_s11, 4  ;;  %s17_s10 = int_to_ptr.vmem [resolvable:$true] %s16_s10  ;;  %s26_s12 = int_to_ptr.vmem [resolvable:$true] %s25_s12 }
   0x4   :  { %s769_s13 = scalar_lea.vmem %s17_s10, 32  ;;  %p774_p1 = scmp.lt.s32.totalorder %s17_s10, %s17_s10 }
   0x5   :  { %p770_p0 = scmp.ne.s32.totalorder %s17_s10, %s769_s13  ;;  %p775_p2 = scmp.lt.s32.totalorder %s769_s13, %s769_s13 }
   0x7   :  { %p776_p3 = por %p775_p2, %p774_p1 }
   0x9   :  { %p777_p4 = pnand %p776_p3, %p770_p0 }
   0xb   :  { %780 = shalt.err (!%p777_p4)
}
   0xc   :  { %19 = dma.hbm_to_vmem [thread:$0]  %s858_s0, 32, %s17_s10, [#allocation3]  }
   0xd   :  { %s789_s16 = scalar_lea.vmem %s26_s12, 8192  ;;  %p794_p6 = scmp.lt.s32.totalorder %s26_s12, %s26_s12 }
   0xe   :  { %p790_p5 = scmp.ne.s32.totalorder %s26_s12, %s789_s16  ;;  %p795_p7 = scmp.lt.s32.totalorder %s789_s16, %s789_s16 }
  0x10   :  { %p796_p8 = por %p795_p7, %p794_p6 }
  0x12   :  { %p797_p9 = pnand %p796_p8, %p790_p5 }
  0x14   :  { %800 = shalt.err (!%p797_p9)
}
  0x15   :  { %s829_s17 = smov 256   ;;  %s830_s18 = smov 16  }
  0x16   :  { %31 = dma.hbm_to_vmem [thread:$0]  %s859_s1, 8192, %s26_s12, [#allocation6], %s829_s17, %s829_s17, %s830_s18  }
  0x17   :  { %821 = dma.done.wait [#allocation3], 32  }
  0x18   :  { %822 = vsyncadd [#allocation3], 4294967264 }
  0x19   :  { %823 = dma.done.wait [#allocation6], 8192  }
  0x1a   :  { %824 = vsyncadd [#allocation6], 4294959104  ;;  %v663_v0 = vld [vmem:[#allocation5 + $0xe4] ss:$16 sps:$4 sm:$0xff]   ;;  %v665_v1 = vld [vmem:[#allocation5 + $0xec] ss:$16 sps:$4 sm:$0xff]   ;;  %v45_v36 = vlaneseq }
  0x1b   :  { %468 = vmatprep.subr.bf16.mxu0 %v663_v0  ;;  %v667_v2 = vld [vmem:[#allocation5 + $0xe0] ss:$16 sps:$4 sm:$0xff]   ;;  %v668_v3 = vld [vmem:[#allocation5 + $0xe8] ss:$16 sps:$4 sm:$0xff]   ;;  %509 = vmatprep.subr.bf16.mxu1 %v665_v1  ;;  %v669_v4 = vld [vmem:[#allocation5 + $0xc4] ss:$16 sps:$4 sm:$0xff]  }
  0x1c   :  { %469 = vmatpush1.bf16.msra.mxu0 %v667_v2  ;;  %510 = vmatpush1.bf16.msra.mxu1 %v668_v3  ;;  %v671_v5 = vld [vmem:[#allocation5 + $0xcc] ss:$16 sps:$4 sm:$0xff]   ;;  %v673_v6 = vld [vmem:[#allocation5 + $0xc0] ss:$16 sps:$4 sm:$0xff]   ;;  %v674_v7 = vld [vmem:[#allocation5 + $0xc8] ss:$16 sps:$4 sm:$0xff]  }
  0x1d   :  { %470 = vmatprep.subr.bf16.mxu0 %v669_v4  ;;  %511 = vmatprep.subr.bf16.mxu1 %v671_v5  ;;  %v675_v8 = vld [vmem:[#allocation5 + $0xa4] ss:$16 sps:$4 sm:$0xff]   ;;  %v677_v9 = vld [vmem:[#allocation5 + $0xac] ss:$16 sps:$4 sm:$0xff]   ;;  %v679_v10 = vld [vmem:[#allocation5 + $0xa0] ss:$16 sps:$4 sm:$0xff]  }
  0x1e   :  { %v680_v11 = vld [vmem:[#allocation5 + $0xa8] ss:$16 sps:$4 sm:$0xff]   ;;  %v681_v12 = vld [vmem:[#allocation5 + $0x84] ss:$16 sps:$4 sm:$0xff]   ;;  %v683_v13 = vld [vmem:[#allocation5 + $0x8c] ss:$16 sps:$4 sm:$0xff]  }
  0x1f   :  { %v685_v14 = vld [vmem:[#allocation5 + $0x80] ss:$16 sps:$4 sm:$0xff]   ;;  %v686_v15 = vld [vmem:[#allocation5 + $0x88] ss:$16 sps:$4 sm:$0xff]   ;;  %v687_v16 = vld [vmem:[#allocation5 + $0x64] ss:$16 sps:$4 sm:$0xff]  }
  0x20   :  { %471 = vmatpush1.bf16.msra.mxu0 %v673_v6  ;;  %512 = vmatpush1.bf16.msra.mxu1 %v674_v7  ;;  %v689_v17 = vld [vmem:[#allocation5 + $0x6c] ss:$16 sps:$4 sm:$0xff]   ;;  %v691_v18 = vld [vmem:[#allocation5 + $0x60] ss:$16 sps:$4 sm:$0xff]   ;;  %v692_v19 = vld [vmem:[#allocation5 + $0x68] ss:$16 sps:$4 sm:$0xff]  }
  0x21   :  { %472 = vmatprep.subr.bf16.mxu0 %v675_v8  ;;  %513 = vmatprep.subr.bf16.mxu1 %v677_v9  ;;  %v693_v20 = vld [vmem:[#allocation5 + $0x44] ss:$16 sps:$4 sm:$0xff]   ;;  %v695_v21 = vld [vmem:[#allocation5 + $0x4c] ss:$16 sps:$4 sm:$0xff]   ;;  %v697_v22 = vld [vmem:[#allocation5 + $0x40] ss:$16 sps:$4 sm:$0xff]  }
  0x22   :  { %v698_v23 = vld [vmem:[#allocation5 + $0x48] ss:$16 sps:$4 sm:$0xff]   ;;  %v699_v24 = vld [vmem:[#allocation5 + $0x24] ss:$16 sps:$4 sm:$0xff]   ;;  %v701_v25 = vld [vmem:[#allocation5 + $0x2c] ss:$16 sps:$4 sm:$0xff]  }
  0x23   :  { %v703_v26 = vld [vmem:[#allocation5 + $0x20] ss:$16 sps:$4 sm:$0xff]   ;;  %v704_v27 = vld [vmem:[#allocation5 + $0x28] ss:$16 sps:$4 sm:$0xff]   ;;  %v705_v28 = vld [vmem:[#allocation5 + $0x4] ss:$16 sps:$4 sm:$0xff]  }
  0x24   :  { %473 = vmatpush1.bf16.msra.mxu0 %v679_v10  ;;  %514 = vmatpush1.bf16.msra.mxu1 %v680_v11  ;;  %v707_v29 = vld [vmem:[#allocation5 + $0xc] ss:$16 sps:$4 sm:$0xff]   ;;  %v709_v30 = vld [vmem:[#allocation5] ss:$16 sps:$4 sm:$0xff]   ;;  %v710_v31 = vld [vmem:[#allocation5 + $0x8] ss:$16 sps:$4 sm:$0xff]  }
  0x25   :  { %474 = vmatprep.subr.bf16.mxu0 %v681_v12  ;;  %515 = vmatprep.subr.bf16.mxu1 %v683_v13  ;;  %v711_v32 = vld [vmem:[#allocation5 + $0x1e4] ss:$16 sps:$4 sm:$0xff]   ;;  %v713_v33 = vld [vmem:[#allocation5 + $0x1ec] ss:$16 sps:$4 sm:$0xff]   ;;  %v715_v34 = vld [vmem:[#allocation5 + $0x1e0] ss:$16 sps:$4 sm:$0xff]  }
  0x26   :  { %v716_v35 = vld [vmem:[#allocation5 + $0x1e8] ss:$16 sps:$4 sm:$0xff]   ;;  %v831_v37 = vmov 1966171168   ;;  %v717_v39 = vld [vmem:[#allocation5 + $0x1c4] ss:$16 sps:$4 sm:$0xff]  }
  0x27   :  { %v125_v38 = vunpack.c.l.s4 %v831_v37  ;;  %v719_v40 = vld [vmem:[#allocation5 + $0x1cc] ss:$16 sps:$4 sm:$0xff]   ;;  %v721_v41 = vld [vmem:[#allocation5 + $0x1c0] ss:$16 sps:$4 sm:$0xff]   ;;  %v46_v42 = vshrl.u32 %v45_v36, 7  ;;  %vm52_vm0 = vcmask 1041408  }
  0x28   :  { %475 = vmatpush1.bf16.msra.mxu0 %v685_v14  ;;  %516 = vmatpush1.bf16.msra.mxu1 %v686_v15  ;;  %v832_v44 = vmov 1983009808   ;;  %v722_v46 = vld [vmem:[#allocation5 + $0x1c8] ss:$16 sps:$4 sm:$0xff]   ;;  %v723_v47 = vld [vmem:[#allocation5 + $0x1a4] ss:$16 sps:$4 sm:$0xff]  }
  0x29   :  { %476 = vmatprep.subr.bf16.mxu0 %v687_v16  ;;  %517 = vmatprep.subr.bf16.mxu1 %v689_v17  ;;  %v126_v43 = vunpack.c.0.s8 %v125_v38  ;;  %v43_v45 = vunpack.c.l.s4 %v832_v44  ;;  %v725_v48 = vld [vmem:[#allocation5 + $0x1ac] ss:$16 sps:$4 sm:$0xff]   ;;  %v727_v49 = vld [vmem:[#allocation5 + $0x1a0] ss:$16 sps:$4 sm:$0xff]   ;;  %v728_v50 = vld [vmem:[#allocation5 + $0x1a8] ss:$16 sps:$4 sm:$0xff]  }
  0x2a   :  { %v729_v53 = vld [vmem:[#allocation5 + $0x184] ss:$16 sps:$4 sm:$0xff]   ;;  %v731_v54 = vld [vmem:[#allocation5 + $0x18c] ss:$16 sps:$4 sm:$0xff]   ;;  %v733_v59 = vld [vmem:[#allocation5 + $0x180] ss:$16 sps:$4 sm:$0xff]  }
  0x2b   :  { %v129_v51 = vsub.s32 %v126_v43, %v46_v42  ;;  %v44_v52 = vunpack.c.0.s8 %v43_v45  ;;  %v38_v55 = vld [vmem:[#allocation2] sm:$0x3]  ;;  %v734_v60 = vld [vmem:[#allocation5 + $0x188] ss:$16 sps:$4 sm:$0xff]   ;;  %v735_v61 = vld [vmem:[#allocation5 + $0x164] ss:$16 sps:$4 sm:$0xff]  }
  0x2c   :  { %477 = vmatpush1.bf16.msra.mxu0 %v691_v18  ;;  %518 = vmatpush1.bf16.msra.mxu1 %v692_v19  ;;  %v39_v57 = vunpack.c.l.bf16 %v38_v55  ;;  %v737_v62 = vld [vmem:[#allocation5 + $0x16c] ss:$16 sps:$4 sm:$0xff]   ;;  %v739_v3 = vld [vmem:[#allocation5 + $0x160] ss:$16 sps:$4 sm:$0xff]   ;;  %v740_v4 = vld [vmem:[#allocation5 + $0x168] ss:$16 sps:$4 sm:$0xff]  }
  0x2d   :  { %478 = vmatprep.subr.bf16.mxu0 %v693_v20  ;;  %519 = vmatprep.subr.bf16.mxu1 %v695_v21  ;;  %v130_v56 = vrot.slane %v38_v55, %v129_v51  ;;  %v47_v58 = vsub.s32 %v44_v52, %v46_v42  ;;  %v741_v5 = vld [vmem:[#allocation5 + $0x144] ss:$16 sps:$4 sm:$0xff]   ;;  %v743_v6 = vld [vmem:[#allocation5 + $0x14c] ss:$16 sps:$4 sm:$0xff]   ;;  %v745_v10 = vld [vmem:[#allocation5 + $0x140] ss:$16 sps:$4 sm:$0xff]  }
  0x2e   :  { %v40_v0 = vmul.f32 %v39_v57, %v39_v57  ;;  %v746_v11 = vld [vmem:[#allocation5 + $0x148] ss:$16 sps:$4 sm:$0xff]   ;;  %v747_v13 = vld [vmem:[#allocation5 + $0x124] ss:$16 sps:$4 sm:$0xff]   ;;  %v749_v14 = vld [vmem:[#allocation5 + $0x12c] ss:$16 sps:$4 sm:$0xff]  }
  0x2f   :  { %v131_v63 = vcombine.high %v130_v56, %v130_v56  ;;  %v751_v15 = vld [vmem:[#allocation5 + $0x120] ss:$16 sps:$4 sm:$0xff]   ;;  %v752_v16 = vld [vmem:[#allocation5 + $0x128] ss:$16 sps:$4 sm:$0xff]   ;;  %v753_v17 = vld [vmem:[#allocation5 + $0x104] ss:$16 sps:$4 sm:$0xff]   ;;  %v138_v21 = vrot.slane %v130_v56, %v129_v51 }
  0x30   :  { %479 = vmatpush1.bf16.msra.mxu0 %v697_v22  ;;  %520 = vmatpush1.bf16.msra.mxu1 %v698_v23  ;;  %v48_v2 = vrot.slane %v40_v0, %v47_v58  ;;  %v755_v18 = vld [vmem:[#allocation5 + $0x10c] ss:$16 sps:$4 sm:$0xff]   ;;  %v757_v19 = vld [vmem:[#allocation5 + $0x100] ss:$16 sps:$4 sm:$0xff]   ;;  %v758_v20 = vld [vmem:[#allocation5 + $0x108] ss:$16 sps:$4 sm:$0xff]  }
  0x31   :  { %480 = vmatprep.subr.bf16.mxu0 %v699_v24  ;;  %521 = vmatprep.subr.bf16.mxu1 %v701_v25  ;;  %v145_v1 = vrot.slane %v131_v63, %v129_v51  ;;  %s833_s0 = smov [#allocation7]  }
  0x32   :  { %v49_v7 = vcombine.high %v48_v2, %v48_v2  ;;  %v53_v8 = vsel %vm52_vm0, %v48_v2, 0.0  ;;  %s581_s1 = sshll.u32 %s833_s0, 4  ;;  %s582_s1 = int_to_ptr.vmem [resolvable:$true] %s581_s1 }
  0x33   :  { %500 = vmatprep.mubr.bf16.mxu0 %v145_v1  ;;  %541 = vmatprep.mubr.bf16.mxu1 %v145_v1  ;;  %s801_s21 = scalar_lea.vmem %s582_s1, 64  ;;  %p806_p11 = scmp.lt.s32.totalorder %s582_s1, %s582_s1 }
  0x34   :  { %481 = vmatpush1.bf16.msra.mxu0 %v703_v26  ;;  %522 = vmatpush1.bf16.msra.mxu1 %v704_v27  ;;  %v54_v9 = vsel %vm52_vm0, %v49_v7, 0.0  ;;  %p802_p10 = scmp.ne.s32.totalorder %s582_s1, %s801_s21  ;;  %p807_p12 = scmp.lt.s32.totalorder %s801_s21, %s801_s21 }
  0x35   :  { %482 = vmatprep.subr.bf16.mxu0 %v705_v28  ;;  %523 = vmatprep.subr.bf16.mxu1 %v707_v29  ;;  %v55_v12 = vadd.f32 %v54_v9, %v53_v8 }
  0x36   :  { %p808_p13 = por %p807_p12, %p806_p11 }
  0x37   :  { %56 = vadd.xlane.f32.xlu0 %v55_v12 }
  0x38   :  { %483 = vmatpush1.bf16.msra.mxu0 %v709_v30  ;;  %524 = vmatpush1.bf16.msra.mxu1 %v710_v31  ;;  %p809_p0 = pnand %p808_p13, %p802_p10 }
  0x39   :  { %484 = vmatprep.subr.bf16.mxu0 %v711_v32  ;;  %525 = vmatprep.subr.bf16.mxu1 %v713_v33 }
  0x3c   :  { %485 = vmatpush2.bf16.msra.mxu0 %v715_v34  ;;  %526 = vmatpush2.bf16.msra.mxu1 %v716_v35 }
  0x3d   :  { %486 = vmatprep.subr.bf16.mxu0 %v717_v39  ;;  %527 = vmatprep.subr.bf16.mxu1 %v719_v40 }
  0x40   :  { %487 = vmatpush2.bf16.msra.mxu0 %v721_v41  ;;  %528 = vmatpush2.bf16.msra.mxu1 %v722_v46 }
  0x41   :  { %488 = vmatprep.subr.bf16.mxu0 %v723_v47  ;;  %529 = vmatprep.subr.bf16.mxu1 %v725_v48 }
  0x44   :  { %489 = vmatpush2.bf16.msra.mxu0 %v727_v49  ;;  %530 = vmatpush2.bf16.msra.mxu1 %v728_v50 }
  0x45   :  { %490 = vmatprep.subr.bf16.mxu0 %v729_v53  ;;  %531 = vmatprep.subr.bf16.mxu1 %v731_v54 }
  0x48   :  { %491 = vmatpush2.bf16.msra.mxu0 %v733_v59  ;;  %532 = vmatpush2.bf16.msra.mxu1 %v734_v60 }
  0x49   :  { %492 = vmatprep.subr.bf16.mxu0 %v735_v61  ;;  %533 = vmatprep.subr.bf16.mxu1 %v737_v62 }
  0x4c   :  { %493 = vmatpush2.bf16.msra.mxu0 %v739_v3  ;;  %534 = vmatpush2.bf16.msra.mxu1 %v740_v4 }
  0x4d   :  { %494 = vmatprep.subr.bf16.mxu0 %v741_v5  ;;  %535 = vmatprep.subr.bf16.mxu1 %v743_v6 }
  0x50   :  { %495 = vmatpush2.bf16.msra.mxu0 %v745_v10  ;;  %536 = vmatpush2.bf16.msra.mxu1 %v746_v11 }
  0x51   :  { %496 = vmatprep.subr.bf16.mxu0 %v747_v13  ;;  %537 = vmatprep.subr.bf16.mxu1 %v749_v14 }
  0x54   :  { %497 = vmatpush2.bf16.msra.mxu0 %v751_v15  ;;  %538 = vmatpush2.bf16.msra.mxu1 %v752_v16 }
  0x55   :  { %498 = vmatprep.subr.bf16.mxu0 %v753_v17  ;;  %539 = vmatprep.subr.bf16.mxu1 %v755_v18 }
  0x58   :  { %499 = vmatpush2.bf16.msra.mxu0 %v757_v19  ;;  %540 = vmatpush2.bf16.msra.mxu1 %v758_v20 }
  0x5b   :  { %501 = vmatmul.mubr.bf16.vlgmr.msra.gmra.mxu0 %v138_v21  ;;  %542 = vmatmul.mubr.bf16.vlgmr.msra.gmra.mxu1 %v138_v21 }
  0xc0   :  { %v57_v22 = vpop.xlane.xlu0 %56 }
  0xc1   :  { %v58_v23 = vadd.f32 1e-30, %v57_v22 }
  0xc3   :  { %759 = vrcp.f32 %v58_v23 }
  0xd0   :  { %v760_v28 = vpop.eup %759 }
 0x11b   :  { %v502_v24 = vpop.f32.mrf.mxu0  ;;  %v543_v25 = vpop.f32.mrf.mxu1 }
 0x11c   :  { %v550_v26 = vmul.f32 %v502_v24, %v502_v24  ;;  %v552_v27 = vmul.f32 %v543_v25, %v543_v25 }
 0x11d   :  { %v504_v29 = vpop.f32.mrf.mxu0  ;;  %v545_v30 = vpop.f32.mrf.mxu1 }
 0x11e   :  { %v554_v31 = vadd.f32 %v552_v27, %v550_v26  ;;  %v551_v32 = vmul.f32 %v504_v29, %v504_v29  ;;  %v553_v33 = vmul.f32 %v545_v30, %v545_v30 }
 0x11f   :  { %v506_v34 = vpop.f32.mrf.mxu0  ;;  %v547_v35 = vpop.f32.mrf.mxu1 }
 0x120   :  { %v557_v36 = vmul.f32 %v760_v28, %v554_v31  ;;  %v555_v37 = vadd.f32 %v553_v33, %v551_v32 }
 0x121   :  { %v507_v38 = vpop.f32.mrf.mxu0  ;;  %v548_v39 = vpop.f32.mrf.mxu1 }
 0x122   :  { %v559_v40 = vmax.f32 %v557_v36, 0.0  ;;  %v558_v41 = vmul.f32 %v760_v28, %v555_v37 }
 0x124   :  { %v560_v42 = vmax.f32 %v558_v41, 0.0  ;;  %v561_v43 = vmin.f32 %v559_v40, 1.0 }
 0x126   :  { %v562_v44 = vmin.f32 %v560_v42, 1.0 }
 0x128   :  { %v565_v45 = vcombine.low %v561_v43, %v562_v44 }
 0x12a   :  { %655 = vst.sshfl [vmem:[#allocation7] sm:$0x33 pattern:$0x76325410] %v565_v45 }
 0x12b   :  { %812 = shalt.err (!%p809_p0)
}
 0x12c   :  { %584 = dma.vmem_to_hbm [thread:$0]  %s582_s1, 64, %s860_s2, [#allocation4]  }
 0x12d   :  { %825 = dma.done.wait [#allocation4], 64  }
 0x12e   :  { %826 = vsyncadd [#allocation4], 4294967232 }
 0x12f   :  { %588 = vsyncpa [#allocation3], 1 }
 0x130   :  { %589 = vsyncpa [#allocation6], 1 }
 0x131   :  { %590 = vsyncpa [#allocation4], 1 }

</bundles_post_ra>
